<compile_context>
chip_gen: v6e
topology: v6e:2x2x1
jax: 0.10.0
libtpu: 0.0.40
codegen_flags: <defaults>
</compile_context>

<pallas_src>
import functools

import jax
import jax.numpy as jnp
from jax.experimental import pallas as pl
from jax.experimental.pallas import tpu as pltpu


def _tpu_generation():
    """Best-effort TPU generation (4/5/6/7) from device_kind; None if unknown."""
    try:
        kind = jax.devices()[0].device_kind.lower()
    except Exception:
        return None
    for g in (7, 6, 5, 4):
        if f"v{g}" in kind:
            return g
    return None


def _layernorm_kernel(x_ref, w_ref, b_ref, o_ref, *, eps, hidden, bf16_norm):
    # x_ref: (block_rows, hidden) tile in VMEM; w_ref / b_ref: (1, hidden).
    x = x_ref[...].astype(jnp.float32)
    inv_h = jnp.float32(1.0 / hidden)

    # Two-pass centered variance: mean first, then sum((x - mean)^2) over the
    # tile that is already resident in VMEM (second pass is free at the HBM
    # roofline) -> matches torch's (x - u).pow(2).mean(-1) without f32
    # cancellation, so no clamp needed.
    mean = jnp.sum(x, axis=-1, keepdims=True) * inv_h
    xc = x - mean
    var = jnp.sum(xc * xc, axis=-1, keepdims=True) * inv_h
    inv = jax.lax.rsqrt(var + jnp.float32(eps))

    if bf16_norm:
        # v6e/v7x bf16 I/O: do normalize + affine in packed bf16 VPU ops
        # (halves VALU bundles); statistics stayed in f32 above.
        y = xc.astype(jnp.bfloat16) * inv.astype(jnp.bfloat16)
        o_ref[...] = (w_ref[...] * y + b_ref[...]).astype(o_ref.dtype)
    else:
        y = xc * inv
        o_ref[...] = (w_ref[...] * y + b_ref[...]).astype(o_ref.dtype)
    # Note: in the (masked) partial tail block the padded rows may transiently
    # hold NaN/Inf; the masked store discards them, output is unaffected.


def _choose_block_rows(rows, hidden, itemsize, vmem_phys):
    """Row-tile size: ~8 MiB per input buffer, bounded by VMEM and megacore."""
    # Keep the double-buffered in+out working set (~4x tile) within ~60% of
    # physical VMEM; on v5e/v6e (128 MiB) the 8 MiB target binds first.
    target_bytes = min(8 * 1024 * 1024, (vmem_phys * 6 // 10) // 4)
    row_bytes = max(1, hidden * itemsize)
    br = max(1, target_bytes // row_bytes)
    if br >= rows:
        br = rows
    else:
        # Multiple of 16 rows covers both f32 (8,) and bf16 (16,) sublane packing.
        br = max(16, (br // 16) * 16)
    # Megacore guard: for non-tiny inputs keep >= 4 grid steps so the
    # "parallel" row axis shards across both v7x TensorCores.
    if rows >= 64:
        cap = max(16, (pl.cdiv(rows, 4) // 16) * 16)
        br = min(br, cap)
    return min(br, rows)


def bert_layernorm(x, weight, bias, eps=1e-12, block_rows=None):
    """x: (..., hidden); weight, bias: (hidden,). Normalizes over the last dim."""
    orig_shape = x.shape
    hidden = orig_shape[-1]
    x2 = x.reshape(-1, hidden)
    rows = x2.shape[0]
    itemsize = jnp.dtype(x2.dtype).itemsize

    gen = _tpu_generation()
    # Physical VMEM per TensorCore: 64 MiB on v7x (and as a safe default),
    # 128 MiB on v5e/v6e.
    vmem_phys = 128 * 1024 * 1024 if gen in (5, 6) else 64 * 1024 * 1024

    if block_rows is None:
        block_rows = _choose_block_rows(rows, hidden, itemsize, vmem_phys)

    grid = (pl.cdiv(rows, block_rows),)

    # bf16 normalize/affine only where the VPU has bf16 (v6e/v7x) and the I/O
    # dtype is already bf16; never for f32 inputs (precision) or v5e (no bf16 VPU).
    bf16_norm = bool(x2.dtype == jnp.bfloat16 and gen in (6, 7))
    param_dtype = jnp.bfloat16 if bf16_norm else jnp.float32

    # Hoisted, one-time cast of the affine params; constant index_map keeps
    # them VMEM-resident across the whole grid.
    w2 = weight.astype(param_dtype).reshape(1, hidden)
    b2 = bias.astype(param_dtype).reshape(1, hidden)

    # Scoped-VMEM budget sized per generation: double-buffered in+out tiles
    # plus params plus margin, clamped to <= 3/4 of physical VMEM
    # (<= 48 MiB on v7x, <= 96 MiB on v5e/v6e), never below 32 MiB.
    tile_bytes = block_rows * hidden * itemsize
    vmem_limit = 4 * tile_bytes + 4 * hidden * jnp.dtype(param_dtype).itemsize + (4 << 20)
    vmem_limit = max(32 << 20, vmem_limit)
    vmem_limit = min(vmem_limit, (vmem_phys * 3) // 4, 96 << 20)

    cost = pl.CostEstimate(
        flops=9 * rows * hidden,
        transcendentals=rows,
        bytes_accessed=2 * rows * hidden * itemsize
        + 2 * hidden * jnp.dtype(param_dtype).itemsize,
    )

    # Note: hidden sizes that are not a multiple of 128 (like the tiny demo
    # below) fall back to masked partial-lane stores; production BERT hidden
    # sizes (768/1024/...) are lane-dense and unaffected.
    out = pl.pallas_call(
        functools.partial(
            _layernorm_kernel, eps=eps, hidden=hidden, bf16_norm=bf16_norm
        ),
        out_shape=jax.ShapeDtypeStruct((rows, hidden), x.dtype),
        grid_spec=pltpu.PrefetchScalarGridSpec(
            num_scalar_prefetch=0,
            grid=grid,
            in_specs=[
                pl.BlockSpec((block_rows, hidden), lambda i: (i, 0)),
                pl.BlockSpec((1, hidden), lambda i: (0, 0)),
                pl.BlockSpec((1, hidden), lambda i: (0, 0)),
            ],
            out_specs=pl.BlockSpec((block_rows, hidden), lambda i: (i, 0)),
        ),
        compiler_params=pltpu.CompilerParams(
            dimension_semantics=("parallel",),
            vmem_limit_bytes=int(vmem_limit),
        ),
        cost_estimate=cost,
    )(x2, w2, b2)

    return out.reshape(orig_shape)


def bert_layernorm_ref(x, weight, bias, eps=1e-12):
    u = jnp.mean(x, axis=-1, keepdims=True)
    s = jnp.mean((x - u) ** 2, axis=-1, keepdims=True)
    xn = (x - u) / jnp.sqrt(s + eps)
    return weight * xn + bias


if __name__ == "__main__":
    key = jax.random.PRNGKey(0)
    batch, seq, hidden = 2, 8, 32

    x = jax.random.normal(key, (batch, seq, hidden), dtype=jnp.float32)

    # Deterministic parameter init matching nn.Parameter(torch.ones / zeros)
    weight = jnp.ones((hidden,), dtype=jnp.float32)
    bias = jnp.zeros((hidden,), dtype=jnp.float32)

    out = bert_layernorm(x, weight, bias)
    out = jax.block_until_ready(out)

    ref = bert_layernorm_ref(x, weight, bias)
    assert out.shape == x.shape
    assert jnp.allclose(out, ref, atol=1e-5, rtol=1e-5), "mismatch vs reference"

    print("KERNEL_OK")
</pallas_src>

<mosaic_0001>
module attributes {stable_mosaic.version = 11 : i64} {
  func.func @_layernorm_kernel(%arg0: i32, %arg1: memref<16x32xf32, #tpu.memory_space<vmem>>, %arg2: memref<1x32xf32, #tpu.memory_space<vmem>>, %arg3: memref<1x32xf32, #tpu.memory_space<vmem>>, %arg4: memref<16x32xf32, #tpu.memory_space<vmem>>) attributes {dimension_semantics = [#tpu.dimension_semantics<parallel>], iteration_bounds = array<i64: 1>, scalar_prefetch = 0 : i64, scratch_operands = 0 : i64, tpu.core_type = #tpu.core_type<tc>, window_params = [{transform_indices = @transform_0, window_bounds = array<i64: 16, 32>}, {pipeline_mode = #tpu.pipeline_mode<synchronous>, transform_indices = @transform_1, window_bounds = array<i64: 1, 32>}, {pipeline_mode = #tpu.pipeline_mode<synchronous>, transform_indices = @transform_2, window_bounds = array<i64: 1, 32>}, {transform_indices = @transform_3, window_bounds = array<i64: 16, 32>}]} {
    %c0 = arith.constant 0 : index
    %c0_0 = arith.constant 0 : index
    %0 = vector.load %arg1[%c0, %c0_0] : memref<16x32xf32, #tpu.memory_space<vmem>>, vector<16x32xf32>
    %cst = arith.constant dense<0.000000e+00> : vector<16xf32>
    %1 = vector.multi_reduction <add>, %0, %cst [1] : vector<16x32xf32> to vector<16xf32>
    %2 = vector.shape_cast %1 : vector<16xf32> to vector<16x1xf32>
    %cst_1 = arith.constant 3.125000e-02 : f32
    %3 = vector.broadcast %cst_1 : f32 to vector<16x1xf32>
    %4 = arith.mulf %2, %3 : vector<16x1xf32>
    %5 = vector.broadcast %4 : vector<16x1xf32> to vector<16x32xf32>
    %6 = arith.subf %0, %5 : vector<16x32xf32>
    %7 = arith.mulf %6, %6 : vector<16x32xf32>
    %cst_2 = arith.constant dense<0.000000e+00> : vector<16xf32>
    %8 = vector.multi_reduction <add>, %7, %cst_2 [1] : vector<16x32xf32> to vector<16xf32>
    %9 = vector.shape_cast %8 : vector<16xf32> to vector<16x1xf32>
    %cst_3 = arith.constant 3.125000e-02 : f32
    %10 = vector.broadcast %cst_3 : f32 to vector<16x1xf32>
    %11 = arith.mulf %9, %10 : vector<16x1xf32>
    %cst_4 = arith.constant 9.99999996E-13 : f32
    %12 = vector.broadcast %cst_4 : f32 to vector<16x1xf32>
    %13 = arith.addf %11, %12 : vector<16x1xf32>
    %14 = math.rsqrt %13 : vector<16x1xf32>
    %15 = vector.broadcast %14 : vector<16x1xf32> to vector<16x32xf32>
    %16 = arith.mulf %6, %15 : vector<16x32xf32>
    %c0_5 = arith.constant 0 : index
    %c0_6 = arith.constant 0 : index
    %17 = vector.load %arg2[%c0_5, %c0_6] : memref<1x32xf32, #tpu.memory_space<vmem>>, vector<1x32xf32>
    %18 = vector.broadcast %17 : vector<1x32xf32> to vector<16x32xf32>
    %19 = arith.mulf %18, %16 : vector<16x32xf32>
    %c0_7 = arith.constant 0 : index
    %c0_8 = arith.constant 0 : index
    %20 = vector.load %arg3[%c0_7, %c0_8] : memref<1x32xf32, #tpu.memory_space<vmem>>, vector<1x32xf32>
    %21 = vector.broadcast %20 : vector<1x32xf32> to vector<16x32xf32>
    %22 = arith.addf %19, %21 : vector<16x32xf32>
    %c0_9 = arith.constant 0 : index
    %c0_10 = arith.constant 0 : index
    %23 = vector.load %arg4[%c0_9, %c0_10] : memref<16x32xf32, #tpu.memory_space<vmem>>, vector<16x32xf32>
    tpu.vector_store %arg4[%c0_9, %c0_10], %22 {strides = array<i32>} : memref<16x32xf32, #tpu.memory_space<vmem>>, vector<16x32xf32>,
    return
  }
  func.func @transform_0(%arg0: i32) -> (i32, i32) {
    %c0_i32 = arith.constant 0 : i32
    %c0_i32_0 = arith.constant 0 : i32
    return %arg0, %c0_i32 : i32, i32
  }
  func.func @transform_1(%arg0: i32) -> (i32, i32) {
    %c0_i32 = arith.constant 0 : i32
    %c0_i32_0 = arith.constant 0 : i32
    %c0_i32_1 = arith.constant 0 : i32
    return %c0_i32, %c0_i32_0 : i32, i32
  }
  func.func @transform_2(%arg0: i32) -> (i32, i32) {
    %c0_i32 = arith.constant 0 : i32
    %c0_i32_0 = arith.constant 0 : i32
    %c0_i32_1 = arith.constant 0 : i32
    return %c0_i32, %c0_i32_0 : i32, i32
  }
  func.func @transform_3(%arg0: i32) -> (i32, i32) {
    %c0_i32 = arith.constant 0 : i32
    %c0_i32_0 = arith.constant 0 : i32
    return %arg0, %c0_i32 : i32, i32
  }
}

</mosaic_0001>

<bundles_post_ra>
// kernel: tpu_custom_call.1
= control target key start
LH: loop header
LB: loop body
LE: loop exit
PB: predicated region body
PF: predicated region fallthrough
CT: control target
= control target key end

     0   :  { %8 = vsyncpa [#allocation3], 0  ;;  %s197_s0 = inlined_call_operand.hbm [shape: f32[16,32], index: 0, kind: input, shape index: {}]   ;;  %s198_s1 = inlined_call_operand.vmem [shape: f32[1,32], index: 1, kind: input, shape index: {}]   ;;  %s199_s2 = inlined_call_operand.vmem [shape: f32[1,32], index: 2, kind: input, shape index: {}]   ;;  %s200_s3 = inlined_call_operand.hbm [shape: f32[16,32], index: 3, kind: output, shape index: {}]  }
   0x1   :  { %9 = vsyncpa [#allocation4], 0  ;;  %s149_s12 = smov [#allocation2]  }
   0x2   :  { %s15_s13 = sshll.u32 %s149_s12, 4  ;;  %s16_s13 = int_to_ptr.vmem [resolvable:$true] %s15_s13 }
   0x3   :  { %s113_s14 = scalar_lea.vmem %s16_s13, 256  ;;  %p118_p1 = scmp.lt.s32.totalorder %s16_s13, %s16_s13 }
   0x4   :  { %p114_p0 = scmp.ne.s32.totalorder %s16_s13, %s113_s14  ;;  %p119_p2 = scmp.lt.s32.totalorder %s113_s14, %s113_s14 }
   0x6   :  { %p120_p3 = por %p119_p2, %p118_p1 }
   0x8   :  { %p121_p4 = pnand %p120_p3, %p114_p0 }
   0xa   :  { %124 = shalt.err (!%p121_p4)
}
   0xb   :  { %s150_s15 = smov 128   ;;  %s151_s16 = smov 8  }
   0xc   :  { %21 = dma.hbm_to_vmem [thread:$0]  %s197_s0, 256, %s16_s13, [#allocation3], %s150_s15, %s150_s15, %s151_s16  }
   0xd   :  { %145 = dma.done.wait [#allocation3], 256  }
   0xe   :  { %146 = vsyncadd [#allocation3], 4294967040  ;;  %vm31_vm0 = vcmask 261120   ;;  %v29_v0 = vld [vmem:[#allocation2] sm:$0xff]  ;;  %v30_v1 = vld [vmem:[#allocation2 + $0x8] sm:$0xff]  ;;  %s152_s22 = smov [#allocation5]  }
   0xf   :  { %v32_v2 = vsel %vm31_vm0, %v29_v0, 0.0  ;;  %v35_v3 = vsel %vm31_vm0, %v30_v1, 0.0  ;;  %v95_v21 = vld [vmem:[%s198_s1] ss:$0 sm:$0xff]  ;;  %s83_s23 = sshll.u32 %s152_s22, 4  ;;  %s84_s23 = int_to_ptr.vmem [resolvable:$true] %s83_s23 }
  0x10   :  { %33 = vadd.xlane.f32.xlu0 %v32_v2  ;;  %v96_v23 = vld [vmem:[%s199_s2] ss:$0 sm:$0xff]  ;;  %s125_s24 = scalar_lea.vmem %s84_s23, 256  ;;  %p130_p6 = scmp.lt.s32.totalorder %s84_s23, %s84_s23 }
  0x11   :  { %p126_p5 = scmp.ne.s32.totalorder %s84_s23, %s125_s24  ;;  %p131_p7 = scmp.lt.s32.totalorder %s125_s24, %s125_s24 }
  0x13   :  { %p132_p8 = por %p131_p7, %p130_p6 }
  0x14   :  { %36 = vadd.xlane.f32.xlu0 %v35_v3 }
  0x15   :  { %p133_p9 = pnand %p132_p8, %p126_p5 }
  0x99   :  { %v34_v4 = vpop.xlane.xlu0 %33 }
  0x9a   :  { %v38_v5 = vmul.f32 0.03125, %v34_v4 }
  0x9c   :  { %v40_v6 = vsub.f32 %v29_v0, %v38_v5 }
  0x9d   :  { %v37_v7 = vpop.xlane.xlu0 %36 }
  0x9e   :  { %v39_v8 = vmul.f32 0.03125, %v37_v7  ;;  %v42_v9 = vmul.f32 %v40_v6, %v40_v6 }
  0xa0   :  { %v41_v10 = vsub.f32 %v30_v1, %v39_v8  ;;  %v44_v11 = vsel %vm31_vm0, %v42_v9, 0.0 }
  0xa1   :  { %45 = vadd.xlane.f32.xlu1 %v44_v11 }
  0xa2   :  { %v43_v12 = vmul.f32 %v41_v10, %v41_v10 }
  0xa4   :  { %v47_v13 = vsel %vm31_vm0, %v43_v12, 0.0 }
  0xa5   :  { %48 = vadd.xlane.f32.xlu1 %v47_v13 }
 0x12a   :  { %v46_v14 = vpop.xlane.xlu1 %45 }
 0x12b   :  { %v50_v15 = vmul.f32 0.03125, %v46_v14 }
 0x12d   :  { %v52_v16 = vadd.f32 1e-12, %v50_v15 }
 0x12e   :  { %v49_v17 = vpop.xlane.xlu1 %48 }
 0x12f   :  { %101 = vrsqrt.f32 %v52_v16  ;;  %v51_v18 = vmul.f32 0.03125, %v49_v17 }
 0x131   :  { %v53_v19 = vadd.f32 1e-12, %v51_v18 }
 0x133   :  { %103 = vrsqrt.f32 %v53_v19 }
 0x13c   :  { %v102_v20 = vpop.eup %101 }
 0x13d   :  { %v56_v22 = vmul.f32 %v102_v20, %v40_v6 }
 0x13f   :  { %v65_v24 = vmul.f32 %v95_v21, %v56_v22 }
 0x140   :  { %v104_v25 = vpop.eup %103 }
 0x141   :  { %v57_v26 = vmul.f32 %v104_v25, %v41_v10  ;;  %v74_v27 = vadd.f32 %v96_v23, %v65_v24 }
 0x143   :  { %v66_v28 = vmul.f32 %v95_v21, %v57_v26  ;;  %76 = vst.msk [vmem:[#allocation5] sm:$0xff] %vm31_vm0, %v74_v27 }
 0x145   :  { %v75_v29 = vadd.f32 %v96_v23, %v66_v28 }
 0x147   :  { %77 = vst.msk [vmem:[#allocation5 + $0x8] sm:$0xff] %vm31_vm0, %v75_v29 }
 0x148   :  { %136 = shalt.err (!%p133_p9)
}
 0x149   :  { %89 = dma.vmem_to_hbm [thread:$0]  %s84_s23, 256, %s200_s3, [#allocation4], %s150_s15, %s150_s15, %s151_s16  }
 0x14a   :  { %147 = dma.done.wait [#allocation4], 256  }
 0x14b   :  { %148 = vsyncadd [#allocation4], 4294967040 }
 0x14c   :  { %93 = vsyncpa [#allocation3], 1 }
 0x14d   :  { %94 = vsyncpa [#allocation4], 1 }

</bundles_post_ra>
